<compile_context>
chip_gen: v6e
topology: v6e:2x2x1
jax: 0.10.0
libtpu: 0.0.40
codegen_flags: <defaults>
</compile_context>

<pallas_src>
import jax
import jax.numpy as jnp
from jax.experimental import pallas as pl
from jax.experimental.pallas import tpu as pltpu


# -----------------------------------------------------------------------------
# Kernel
# -----------------------------------------------------------------------------
def _make_kernel(e_start, num_emotions):
    """Grid kernel over (B tiles, S tiles). Static config baked in via closure."""

    def kernel(h_ref, w1_ref, b1_ref, w2_ref, b2_ref, out_ref, acc_ref):
        s = pl.program_id(1)

        # --- init pooling accumulator at the start of each B tile's S loop ---
        @pl.when(s == 0)
        def _():
            acc_ref[...] = jnp.zeros_like(acc_ref)

        # --- partial sum over this S tile; bf16->f32 cast fused into the
        #     accumulating reduction (no materialized f32 copy of the block) ---
        acc_ref[...] += jnp.sum(h_ref[...], axis=1, dtype=jnp.float32)

        # --- last S tile: fused heads + single lane-dense writeback ---
        @pl.when(s == pl.num_programs(1) - 1)
        def _():
            # 1/S (mean) is folded into w1 at prepare time -> feed the raw sum.
            pooled = acc_ref[...].astype(w1_ref.dtype)           # bf16 for MXU

            # Fused first layers of all three heads: one MXU matmul.
            z = jnp.dot(pooled, w1_ref[...],
                        preferred_element_type=jnp.float32) + b1_ref[...]
            z = jnp.maximum(z, 0.0)   # ReLU (Dropout = identity, eval mode)

            # Block-diagonal second layers -> lane-dense [Bt, OUT_PAD] logits.
            logits = jnp.dot(z.astype(w2_ref.dtype), w2_ref[...],
                             preferred_element_type=jnp.float32) + b2_ref[...]

            # Masked softmax over the emotion columns only. Exact divide (runs
            # once per B tile) so the probabilities sum to 1 downstream.
            col = jax.lax.broadcasted_iota(jnp.int32, logits.shape, 1)
            emask = (col >= e_start) & (col < e_start + num_emotions)
            masked = jnp.where(emask, logits, jnp.float32(-1e30))
            m = jnp.max(masked, axis=-1, keepdims=True)
            e = jnp.exp(masked - m)                              # 0 off-mask
            probs = e / jnp.sum(e, axis=-1, keepdims=True)

            out_ref[...] = jnp.where(emask, probs, logits)

    return kernel


# -----------------------------------------------------------------------------
# Tiling / VMEM helpers
# -----------------------------------------------------------------------------
def _vmem_capacity_bytes():
    """Physical VMEM per core (128 MiB v5e/v6e, 64 MiB v7x); safe fallback."""
    try:
        info = pltpu.get_tpu_info()
        cap = int(getattr(info, "vmem_capacity_bytes", 0))
        if cap > 0:
            return cap
    except Exception:
        pass
    return 64 << 20          # conservative (v7x-sized) fallback


def _pick_tiles(B, S, H, itemsize, vmem_capacity):
    """Pick (b_tile, s_tile) respecting (8,128)/dtype tiling + a VMEM budget."""
    # b_tile: as large as divides B (<= 128), but keep >= 2 tiles on the
    # "parallel" B axis when B allows so both v7x TensorCores get work.
    if B >= 8 and B % 8 == 0:
        cap = min(128, B // 2 if B >= 16 else B)
        cap = max(8, (cap // 8) * 8)
        b_tile = max(c for c in range(8, cap + 1, 8) if B % c == 0)
    else:
        b_tile = B

    # s_tile: dtype-aware stride (bf16 packs 2 rows/sublane -> 16, int8/fp8 ->
    # 32) and a per-buffer budget of ~2-8 MiB derived from physical VMEM.
    stride = {4: 8, 2: 16, 1: 32}.get(itemsize, 8)
    act_budget = min(16 << 20, max(4 << 20, vmem_capacity // 8))
    row_bytes = b_tile * H * itemsize
    cands = [c for c in range(stride, S + 1, stride)
             if S % c == 0 and 2 * c * row_bytes <= act_budget]
    s_tile = max(cands) if cands else S
    return b_tile, s_tile


def _const_spec(shape):
    """Spec for a constant weight (block index never changes): single-buffer."""
    try:
        return pl.BlockSpec(shape, lambda b, s: (0, 0),
                            pipeline_mode=pl.Buffered(1))
    except (TypeError, AttributeError):      # older jax: no pipeline_mode kwarg
        return pl.BlockSpec(shape, lambda b, s: (0, 0))


# -----------------------------------------------------------------------------
# One-time weight packing (hoisted off the hot path)
# -----------------------------------------------------------------------------
def prepare_params(params, seq_len):
    """Pack the three heads into fused, MXU-ready weights (call once).

    - first layers concatenated into one [H, hid_pad] matrix with the 1/seq_len
      mean scale folded in; second layers packed block-diagonally into a
      lane-dense [hid_pad, 128-multiple] matrix.
    - matmul weights stored bf16 (MXU-native, halves HBM/VMEM); biases f32.
    """
    H = params["vw1"].shape[0]
    half = H // 2
    E = params["ew2"].shape[1]
    e_start = 1 + 4                                   # value(1) + quality(4)
    hid_pad = max(128, ((3 * half + 127) // 128) * 128)
    out_pad = max(128, ((e_start + E + 127) // 128) * 128)

    f32 = jnp.float32
    w1 = jnp.zeros((H, hid_pad), f32)
    w1 = w1.at[:, 0:half].set(params["vw1"])
    w1 = w1.at[:, half:2 * half].set(params["qw1"])
    w1 = w1.at[:, 2 * half:3 * half].set(params["ew1"])
    w1 = (w1 * (1.0 / float(seq_len))).astype(jnp.bfloat16)   # fold mean scale

    b1 = jnp.zeros((1, hid_pad), f32)
    b1 = b1.at[:, 0:half].set(params["vb1"])
    b1 = b1.at[:, half:2 * half].set(params["qb1"])
    b1 = b1.at[:, 2 * half:3 * half].set(params["eb1"])

    w2 = jnp.zeros((hid_pad, out_pad), f32)
    w2 = w2.at[0:half, 0:1].set(params["vw2"])
    w2 = w2.at[half:2 * half, 1:5].set(params["qw2"])
    w2 = w2.at[2 * half:3 * half, e_start:e_start + E].set(params["ew2"])
    w2 = w2.astype(jnp.bfloat16)

    b2 = jnp.zeros((1, out_pad), f32)
    b2 = b2.at[:, 0:1].set(params["vb2"])
    b2 = b2.at[:, 1:5].set(params["qb2"])
    b2 = b2.at[:, e_start:e_start + E].set(params["eb2"])

    return dict(w1=w1, b1=b1, w2=w2, b2=b2,
                hidden_size=H, num_emotions=E, seq_len=seq_len,
                e_start=e_start, hid_pad=hid_pad, out_pad=out_pad)


# -----------------------------------------------------------------------------
# Wrapper
# -----------------------------------------------------------------------------
def critic_forward(last_hidden_state, packed, *, b_tile=None, s_tile=None):
    """Mean-pool + fused three-head MLP in one gridded Pallas call.

    `packed` comes from prepare_params(). `last_hidden_state` may be bf16
    (recommended) or f32. Returns a dict mirroring
    CriticAgent.forward(return_quality_breakdown=True).
    """
    B, S, H = last_hidden_state.shape
    assert H == packed["hidden_size"]
    assert S == packed["seq_len"], "1/S is folded into W1 at prepare time"
    E = packed["num_emotions"]
    e_start = packed["e_start"]
    hid_pad = packed["hid_pad"]
    out_pad = packed["out_pad"]
    itemsize = last_hidden_state.dtype.itemsize

    vmem_cap = _vmem_capacity_bytes()
    auto_b, auto_s = _pick_tiles(B, S, H, itemsize, vmem_cap)
    b_tile = auto_b if b_tile is None else b_tile
    s_tile = auto_s if s_tile is None else s_tile
    assert B % b_tile == 0 and (b_tile % 8 == 0 or b_tile == B)
    assert S % s_tile == 0 and (s_tile % 8 == 0 or s_tile == S)

    # Explicit VMEM limit: double-buffered activations + single-buffered
    # weights + output slab + accumulator + headroom, capped at ~0.75x the
    # physical VMEM of the current TPU generation.
    act_bytes = 2 * b_tile * s_tile * H * itemsize
    wgt_bytes = (packed["w1"].size + packed["w2"].size) * 2 \
              + (packed["b1"].size + packed["b2"].size) * 4
    out_bytes = 2 * b_tile * out_pad * 4
    acc_bytes = b_tile * H * 4
    vmem_limit = int(act_bytes + wgt_bytes + out_bytes + acc_bytes + (4 << 20))
    vmem_limit = max(16 << 20, min(vmem_limit, int(0.75 * vmem_cap)))

    kernel = _make_kernel(e_start, E)
    grid = (B // b_tile, S // s_tile)

    out_slab = pl.pallas_call(
        kernel,
        out_shape=jax.ShapeDtypeStruct((B, out_pad), jnp.float32),
        grid_spec=pltpu.PrefetchScalarGridSpec(
            num_scalar_prefetch=0,
            grid=grid,
            in_specs=[
                pl.BlockSpec((b_tile, s_tile, H), lambda b, s: (b, s, 0)),
                _const_spec((H, hid_pad)),
                _const_spec((1, hid_pad)),
                _const_spec((hid_pad, out_pad)),
                _const_spec((1, out_pad)),
            ],
            out_specs=pl.BlockSpec((b_tile, out_pad), lambda b, s: (b, 0)),
            scratch_shapes=[pltpu.VMEM((b_tile, H), jnp.float32)],
        ),
        compiler_params=pltpu.CompilerParams(
            dimension_semantics=("parallel", "arbitrary"),
            vmem_limit_bytes=vmem_limit,
        ),
    )(last_hidden_state, packed["w1"], packed["b1"], packed["w2"], packed["b2"])

    values = out_slab[:, 0]
    quality = out_slab[:, 1:5]
    emotion_probs = out_slab[:, e_start:e_start + E]
    return {
        "values": values,                                 # .squeeze(-1)
        "quality_breakdown": {
            "bleu_score": quality[:, 0],
            "distinct_score": quality[:, 1],
            "empathy_score": quality[:, 2],
            "recommendation_score": quality[:, 3],
        },
        "emotion_probs": emotion_probs,
    }


# -----------------------------------------------------------------------------
# Params + pure-JAX reference
# -----------------------------------------------------------------------------
def init_params(key, hidden_size, num_emotions):
    """Deterministic synthetic init matching the head shapes in __init__.

    Weights stored [in, out] (transposed vs torch nn.Linear), biases [1, out].
    """
    half = hidden_size // 2
    ks = jax.random.split(key, 6)

    def lin(k, fan_in, fan_out):
        scale = 1.0 / jnp.sqrt(fan_in)
        w = jax.random.uniform(k, (fan_in, fan_out), jnp.float32, -scale, scale)
        b = jnp.zeros((1, fan_out), jnp.float32)
        return w, b

    vw1, vb1 = lin(ks[0], hidden_size, half)
    vw2, vb2 = lin(ks[1], half, 1)
    qw1, qb1 = lin(ks[2], hidden_size, half)
    qw2, qb2 = lin(ks[3], half, 4)
    ew1, eb1 = lin(ks[4], hidden_size, half)
    ew2, eb2 = lin(ks[5], half, num_emotions)

    return dict(
        vw1=vw1, vb1=vb1, vw2=vw2, vb2=vb2,
        qw1=qw1, qb1=qb1, qw2=qw2, qb2=qb2,
        ew1=ew1, eb1=eb1, ew2=ew2, eb2=eb2,
    )


def reference_forward(last_hidden_state, params):
    """Pure-JAX reference mirroring the PyTorch module (three separate heads)."""
    pooled = jnp.mean(last_hidden_state.astype(jnp.float32), axis=1)

    def head(w1, b1, w2, b2):
        z = jnp.maximum(pooled @ w1 + b1, 0.0)
        return z @ w2 + b2

    values = head(params["vw1"], params["vb1"], params["vw2"], params["vb2"])[:, 0]
    quality = head(params["qw1"], params["qb1"], params["qw2"], params["qb2"])
    logits = head(params["ew1"], params["eb1"], params["ew2"], params["eb2"])
    probs = jax.nn.softmax(logits, axis=-1)
    return values, quality, probs


# -----------------------------------------------------------------------------
# Smoke test
# -----------------------------------------------------------------------------
if __name__ == "__main__":
    B, S, H = 16, 64, 128        # batch, seq, critic_hidden_size (small)
    NUM_EMOTIONS = 7

    key = jax.random.PRNGKey(0)
    k_h, k_p = jax.random.split(key)

    # Stand-in for base_model(...).last_hidden_state, streamed as bf16.
    last_hidden_state = jax.random.normal(
        k_h, (B, S, H), dtype=jnp.float32).astype(jnp.bfloat16)
    params = init_params(k_p, H, NUM_EMOTIONS)
    packed = prepare_params(params, seq_len=S)   # one-time, off the hot path

    # s_tile=16 -> grid (2, 4): exercises both the "parallel" B axis and the
    # multi-step S accumulation path.
    out = critic_forward(last_hidden_state, packed, s_tile=16)
    jax.block_until_ready(out)

    # Verify against pure-JAX f32 reference (kernel uses bf16 MXU weights, so
    # tolerances are bf16-level).
    ref_values, ref_quality, ref_probs = reference_forward(last_hidden_state, params)
    quality = jnp.stack(
        [
            out["quality_breakdown"]["bleu_score"],
            out["quality_breakdown"]["distinct_score"],
            out["quality_breakdown"]["empathy_score"],
            out["quality_breakdown"]["recommendation_score"],
        ],
        axis=1,
    )
    assert jnp.allclose(out["values"], ref_values, atol=5e-3, rtol=5e-3)
    assert jnp.allclose(quality, ref_quality, atol=5e-3, rtol=5e-3)
    assert jnp.allclose(out["emotion_probs"], ref_probs, atol=5e-3, rtol=5e-3)
    assert jnp.allclose(jnp.sum(out["emotion_probs"], axis=-1), 1.0, atol=1e-3)

    print("KERNEL_OK")
</pallas_src>

<mosaic_0001>
module attributes {stable_mosaic.version = 11 : i64} {
  func.func @kernel(%arg0: i32, %arg1: i32, %arg2: memref<8x16x128xbf16, #tpu.memory_space<vmem>>, %arg3: memref<128x256xbf16, #tpu.memory_space<vmem>>, %arg4: memref<1x256xf32, #tpu.memory_space<vmem>>, %arg5: memref<256x128xbf16, #tpu.memory_space<vmem>>, %arg6: memref<1x128xf32, #tpu.memory_space<vmem>>, %arg7: memref<8x128xf32, #tpu.memory_space<vmem>>, %arg8: memref<8x128xf32, #tpu.memory_space<vmem>>) attributes {dimension_semantics = [#tpu.dimension_semantics<parallel>, #tpu.dimension_semantics<arbitrary>], iteration_bounds = array<i64: 2, 4>, scalar_prefetch = 0 : i64, scratch_operands = 1 : i64, tpu.core_type = #tpu.core_type<tc>, window_params = [{transform_indices = @transform_0, window_bounds = array<i64: 8, 16, 128>}, {pipeline_mode = #tpu.pipeline_mode<synchronous>, transform_indices = @transform_1, window_bounds = array<i64: 128, 256>}, {pipeline_mode = #tpu.pipeline_mode<synchronous>, transform_indices = @transform_2, window_bounds = array<i64: 1, 256>}, {pipeline_mode = #tpu.pipeline_mode<synchronous>, transform_indices = @transform_3, window_bounds = array<i64: 256, 128>}, {pipeline_mode = #tpu.pipeline_mode<synchronous>, transform_indices = @transform_4, window_bounds = array<i64: 1, 128>}, {transform_indices = @transform_5, window_bounds = array<i64: 8, 128>}]} {
    %c0_i32 = arith.constant 0 : i32
    %0 = arith.cmpi eq, %arg1, %c0_i32 : i32
    %1 = arith.extui %0 : i1 to i32
    %c0_i32_0 = arith.constant 0 : i32
    %2 = arith.cmpi ne, %1, %c0_i32_0 : i32
    scf.if %2 {
      %cst_8 = arith.constant 0.000000e+00 : f32
      %12 = vector.broadcast %cst_8 : f32 to vector<8x128xf32>
      %c0_9 = arith.constant 0 : index
      %c0_10 = arith.constant 0 : index
      %13 = vector.load %arg8[%c0_9, %c0_10] : memref<8x128xf32, #tpu.memory_space<vmem>>, vector<8x128xf32>
      tpu.vector_store %arg8[%c0_9, %c0_10], %12 {strides = array<i32>} : memref<8x128xf32, #tpu.memory_space<vmem>>, vector<8x128xf32>,
    } else {
    }
    %c0 = arith.constant 0 : index
    %c0_1 = arith.constant 0 : index
    %3 = vector.load %arg8[%c0, %c0_1] : memref<8x128xf32, #tpu.memory_space<vmem>>, vector<8x128xf32>
    %c0_2 = arith.constant 0 : index
    %c0_3 = arith.constant 0 : index
    %c0_4 = arith.constant 0 : index
    %4 = vector.load %arg2[%c0_2, %c0_3, %c0_4] : memref<8x16x128xbf16, #tpu.memory_space<vmem>>, vector<8x16x128xbf16>
    %5 = arith.extf %4 : vector<8x16x128xbf16> to vector<8x16x128xf32>
    %cst = arith.constant dense<0.000000e+00> : vector<8x128xf32>
    %6 = vector.multi_reduction <add>, %5, %cst [1] : vector<8x16x128xf32> to vector<8x128xf32>
    %7 = arith.addf %3, %6 : vector<8x128xf32>
    %c0_5 = arith.constant 0 : index
    %c0_6 = arith.constant 0 : index
    %8 = vector.load %arg8[%c0_5, %c0_6] : memref<8x128xf32, #tpu.memory_space<vmem>>, vector<8x128xf32>
    tpu.vector_store %arg8[%c0_5, %c0_6], %7 {strides = array<i32>} : memref<8x128xf32, #tpu.memory_space<vmem>>, vector<8x128xf32>,
    %c3_i32 = arith.constant 3 : i32
    %9 = arith.cmpi eq, %arg1, %c3_i32 : i32
    %10 = arith.extui %9 : i1 to i32
    %c0_i32_7 = arith.constant 0 : i32
    %11 = arith.cmpi ne, %10, %c0_i32_7 : i32
    scf.if %11 {
      %c0_8 = arith.constant 0 : index
      %c0_9 = arith.constant 0 : index
      %12 = vector.load %arg8[%c0_8, %c0_9] : memref<8x128xf32, #tpu.memory_space<vmem>>, vector<8x128xf32>
      %13 = arith.truncf %12 : vector<8x128xf32> to vector<8x128xbf16>
      %c0_10 = arith.constant 0 : index
      %c0_11 = arith.constant 0 : index
      %14 = vector.load %arg3[%c0_10, %c0_11] : memref<128x256xbf16, #tpu.memory_space<vmem>>, vector<128x256xbf16>
      %cst_12 = arith.constant dense<0.000000e+00> : vector<8x256xf32>
      %15 = tpu.matmul %13, %14, %cst_12 {dimension_numbers = #tpu.dot_dimension_numbers<[1], [0], [0], [1], [0, 0, 1, 1], [], []>} : vector<8x128xbf16>, vector<128x256xbf16>, vector<8x256xf32> -> vector<8x256xf32>
      %c0_13 = arith.constant 0 : index
      %c0_14 = arith.constant 0 : index
      %16 = vector.load %arg4[%c0_13, %c0_14] : memref<1x256xf32, #tpu.memory_space<vmem>>, vector<1x256xf32>
      %17 = vector.broadcast %16 : vector<1x256xf32> to vector<8x256xf32>
      %18 = arith.addf %15, %17 : vector<8x256xf32>
      %cst_15 = arith.constant 0.000000e+00 : f32
      %19 = vector.broadcast %cst_15 : f32 to vector<8x256xf32>
      %20 = arith.maximumf %18, %19 : vector<8x256xf32>
      %21 = arith.truncf %20 : vector<8x256xf32> to vector<8x256xbf16>
      %c0_16 = arith.constant 0 : index
      %c0_17 = arith.constant 0 : index
      %22 = vector.load %arg5[%c0_16, %c0_17] : memref<256x128xbf16, #tpu.memory_space<vmem>>, vector<256x128xbf16>
      %cst_18 = arith.constant dense<0.000000e+00> : vector<8x128xf32>
      %23 = tpu.matmul %21, %22, %cst_18 {dimension_numbers = #tpu.dot_dimension_numbers<[1], [0], [0], [1], [0, 0, 1, 1], [], []>} : vector<8x256xbf16>, vector<256x128xbf16>, vector<8x128xf32> -> vector<8x128xf32>
      %c0_19 = arith.constant 0 : index
      %c0_20 = arith.constant 0 : index
      %24 = vector.load %arg6[%c0_19, %c0_20] : memref<1x128xf32, #tpu.memory_space<vmem>>, vector<1x128xf32>
      %25 = vector.broadcast %24 : vector<1x128xf32> to vector<8x128xf32>
      %26 = arith.addf %23, %25 : vector<8x128xf32>
      %27 = tpu.iota {dimensions = array<i32: 1>} : vector<8x128xi32>
      %c5_i32 = arith.constant 5 : i32
      %28 = vector.broadcast %c5_i32 : i32 to vector<8x128xi32>
      %29 = arith.cmpi sge, %27, %28 : vector<8x128xi32>
      %c12_i32 = arith.constant 12 : i32
      %30 = vector.broadcast %c12_i32 : i32 to vector<8x128xi32>
      %31 = arith.cmpi slt, %27, %30 : vector<8x128xi32>
      %32 = arith.andi %29, %31 : vector<8x128xi1>
      %cst_21 = arith.constant -1.000000e+30 : f32
      %33 = vector.broadcast %cst_21 : f32 to vector<8x128xf32>
      %34 = arith.select %32, %26, %33 : vector<8x128xi1>, vector<8x128xf32>
      %cst_22 = arith.constant dense<0xFF800000> : vector<8xf32>
      %35 = vector.multi_reduction <maximumf>, %34, %cst_22 [1] : vector<8x128xf32> to vector<8xf32>
      %36 = vector.shape_cast %35 : vector<8xf32> to vector<8x1xf32>
      %37 = vector.broadcast %36 : vector<8x1xf32> to vector<8x128xf32>
      %38 = arith.subf %34, %37 : vector<8x128xf32>
      %39 = math.exp %38 : vector<8x128xf32>
      %cst_23 = arith.constant dense<0.000000e+00> : vector<8xf32>
      %40 = vector.multi_reduction <add>, %39, %cst_23 [1] : vector<8x128xf32> to vector<8xf32>
      %41 = vector.shape_cast %40 : vector<8xf32> to vector<8x1xf32>
      %42 = vector.broadcast %41 : vector<8x1xf32> to vector<8x128xf32>
      %43 = arith.divf %39, %42 : vector<8x128xf32>
      %44 = arith.select %32, %43, %26 : vector<8x128xi1>, vector<8x128xf32>
      %c0_24 = arith.constant 0 : index
      %c0_25 = arith.constant 0 : index
      %45 = vector.load %arg7[%c0_24, %c0_25] : memref<8x128xf32, #tpu.memory_space<vmem>>, vector<8x128xf32>
      tpu.vector_store %arg7[%c0_24, %c0_25], %44 {strides = array<i32>} : memref<8x128xf32, #tpu.memory_space<vmem>>, vector<8x128xf32>,
    } else {
    }
    return
  }
  func.func @transform_0(%arg0: i32, %arg1: i32) -> (i32, i32, i32) {
    %c0_i32 = arith.constant 0 : i32
    %c0_i32_0 = arith.constant 0 : i32
    return %arg0, %arg1, %c0_i32 : i32, i32, i32
  }
  func.func @transform_1(%arg0: i32, %arg1: i32) -> (i32, i32) {
    %c0_i32 = arith.constant 0 : i32
    %c0_i32_0 = arith.constant 0 : i32
    %c0_i32_1 = arith.constant 0 : i32
    return %c0_i32, %c0_i32_0 : i32, i32
  }
  func.func @transform_2(%arg0: i32, %arg1: i32) -> (i32, i32) {
    %c0_i32 = arith.constant 0 : i32
    %c0_i32_0 = arith.constant 0 : i32
    %c0_i32_1 = arith.constant 0 : i32
    return %c0_i32, %c0_i32_0 : i32, i32
  }
  func.func @transform_3(%arg0: i32, %arg1: i32) -> (i32, i32) {
    %c0_i32 = arith.constant 0 : i32
    %c0_i32_0 = arith.constant 0 : i32
    %c0_i32_1 = arith.constant 0 : i32
    return %c0_i32, %c0_i32_0 : i32, i32
  }
  func.func @transform_4(%arg0: i32, %arg1: i32) -> (i32, i32) {
    %c0_i32 = arith.constant 0 : i32
    %c0_i32_0 = arith.constant 0 : i32
    %c0_i32_1 = arith.constant 0 : i32
    return %c0_i32, %c0_i32_0 : i32, i32
  }
  func.func @transform_5(%arg0: i32, %arg1: i32) -> (i32, i32) {
    %c0_i32 = arith.constant 0 : i32
    %c0_i32_0 = arith.constant 0 : i32
    return %arg0, %c0_i32 : i32, i32
  }
}

</mosaic_0001>

<bundles_post_ra>
// kernel: tpu_custom_call.1
= control target key start
LH: loop header
LB: loop body
LE: loop exit
PB: predicated region body
PF: predicated region fallthrough
CT: control target
= control target key end

     0   :  { %s1680_s0 = inlined_call_operand.hbm [shape: bf16[16,64,128], index: 0, kind: input, shape index: {}]   ;;  %s1681_s1 = inlined_call_operand.hbm [shape: bf16[128,256], index: 1, kind: input, shape index: {}]   ;;  %s1682_s2 = inlined_call_operand.vmem [shape: f32[1,256], index: 2, kind: input, shape index: {}]   ;;  %s1683_s3 = inlined_call_operand.hbm [shape: bf16[256,128], index: 3, kind: input, shape index: {}]   ;;  %s1684_s4 = inlined_call_operand.vmem [shape: f32[1,128], index: 4, kind: input, shape index: {}]   ;;  %s1685_s5 = inlined_call_operand.hbm [shape: f32[16,128], index: 5, kind: output, shape index: {}]  }
   0x1   :  { %1695 = sst [smem:[#allocation23_spill]] %s1681_s1 }
   0x2   :  { %1696 = sst [smem:[#allocation24_spill]] %s1683_s3 }
   0x3   :  { %10 = vsyncpa [#allocation4], 0 }
   0x4   :  { %12 = vsyncpa [#allocation4 + $0x1], 0 }
   0x5   :  { %13 = vsyncpa [#allocation7], 0 }
   0x6   :  { %14 = vsyncpa [#allocation5], 0 }
   0x7   :  { %16 = vsyncpa [#allocation5 + $0x1], 0  ;;  %s1427_s18 = smov 0   ;;  %s1429_s19 = smov 0  }
   0x8   :  { %s1431_s20 = smov 0   ;;  %s1433_s21 = smov 0  }
   0x9   :  { %s1435_s22 = smov 0   ;;  %s1437_s23 = smov 0  }
   0xa   :  { %s1439_s24 = smov 0   ;;  %s1441_s25 = smov 0  }
   0xb   :  { %s1443_s26 = smov 0   ;;  %s1445_s27 = smov 0  }
   0xc   :  { %s1447_s28 = smov 0  }
   0xd LB: > { %1697 = sst [smem:[#allocation16_spill]] %s1340_s18  ;;  %s904_s29 = sadd.s32 4294967295, %s1380_s28   ;;  %s1380_s28 = sphi %s1447_s28, %s22_s28   ;;  %s1376_s27 = sphi %s1445_s27, %s1734_s27   ;;  %s1372_s26 = sphi %s1443_s26, %s1733_s26   ;;  %s1368_s25 = sphi %s1441_s25, %s1732_s25   ;;  %s1364_s24 = sphi %s1439_s24, %s1731_s24   ;;  %s1360_s23 = sphi %s1437_s23, %s1730_s23   ;;  %s1356_s22 = sphi %s1435_s22, %s1729_s22   ;;  %s1352_s21 = sphi %s1433_s21, %s1728_s21   ;;  %s1348_s20 = sphi %s1431_s20, %s1722_s20   ;;  %s1344_s19 = sphi %s1429_s19, %s1727_s19   ;;  %s1340_s18 = sphi %s1427_s18, %s1726_s18  }
   0xe   : > { %1698 = sst [smem:[#allocation17_spill]] %s1348_s20  ;;  %s905_s30 = sadd.s32 4294967294, %s1380_s28  }
   0xf   : > { %s31_s6 = sadd.s32 1, %s1372_s26  ;;  %s34_s7 = sadd.s32 1, %s1376_s27 }
  0x10   : > { %p32_p0 = scmp.ge.s32.totalorder %s31_s6, 4  ;;  %s43_s8 = sadd.s32 1, %s1360_s23 }
  0x11   : > { %p50_p1 = scmp.ne.s32.totalorder %s1360_s23, %s1356_s22  ;;  %p51_p2 = scmp.eq.s32.totalorder %s1380_s28, 0 }
  0x12   : > { %s1736_s6 = smov (%p32_p0, %s31_s6), 0  ;;  %s1738_s7 = smov (!%p32_p0, %s34_s7), %s1376_s27 }
  0x13   : > { %1699 = sst [smem:[#allocation18_spill]] %s1736_s6  ;;  %s39_s9 = ssub.s32 %s1372_s26, %s1736_s6 }
  0x14   : > { %p1493_p3 = por %p51_p2, %p50_p1  ;;  %p36_p4 = scmp.ge.s32.totalorder %s1738_s7, 2 }
  0x15   : > { %p56_p5 = scmp.ne.s32.totalorder %s1356_s22, %s1352_s21  ;;  %p1498_p6 = scmp.eq.s32.totalorder %s904_s29, 0 }
  0x16   : > { %s153_s12 = sadd.s32 1, %s1348_s20  ;;  %s1740_s7 = smov (%p36_p4, %s1738_s7), 0 }
  0x17   : > { %s1701_s11 = scalar_select %p1498_p6, 1, 0 }
  0x18   : > { %1702 = sst [smem:[#allocation19_spill]] %s1740_s7  ;;  %p1507_p7 = por %p1498_p6, %p56_p5 }
  0x19   : > { %p163_p8 = scmp.ne.s32.totalorder %s1348_s20, %s1344_s19  ;;  %s38_s14 = ssub.s32 %s1376_s27, %s1740_s7 }
  0x1a   : > { %s1703_s13 = scalar_select %p1507_p7, 1, 0 }
  0x1b   : > { %p164_p9 = scmp.eq.s32.totalorder %s904_s29, 7  ;;  %s40_s15 = sor.u32 %s39_s9, %s38_s14 }
  0x1c   : > { %p151_p10 = scmp.eq.s32.totalorder %s38_s14, 0  ;;  %p41_p11 = scmp.eq.s32.totalorder %s40_s15, 0 }
  0x1d   : > { %p1515_p12 = por %p164_p9, %p163_p8  ;;  %p169_p13 = scmp.ne.s32.totalorder %s1344_s19, %s1340_s18 }
  0x1e   : > { %s1520_s17 = scalar_select %p151_p10, %s1348_s20, %s153_s12  }
  0x1f   : > { %s1704_s16 = scalar_select %p1515_p12, 1, 0 }
  0x20   : > { %1705 = sst [smem:[#allocation20_spill]] %s1520_s17  ;;  %p170_p0 = scmp.eq.s32.totalorder %s905_s30, 7 }
  0x21   : > { %s1523_s21 = scalar_select %p41_p11, %s1360_s23, %s43_s8  }
  0x22   : > { %p906_p1 = scmp.ge.s32.totalorder %s1380_s28, 1  ;;  %p177_p2 = scmp.lt.s32.totalorder %s1380_s28, 9 }
  0x23   : > { %1706 = sst [smem:[#allocation21_spill]] %s1523_s21  ;;  %p1529_p4 = por %p170_p0, %p169_p13 }
  0x24   : > { %p1533_p5 = pnand %p906_p1, %p177_p2  ;;  %s1382_s9 = smov [#allocation6]  }
  0x25   : > { %s1707_s6 = scalar_select %p1529_p4, 1, 0 }
  0x26   : > { %s189_s14 = sshll.u32 %s1382_s9, 4  ;;  %p1042_p8 = pneg %p1533_p5  ;;  %s190_s14 = int_to_ptr.vmem [resolvable:$true] %s189_s14 }
  0x27   : > { %1708 = sst [smem:[#allocation22_spill]] %s1707_s6  ;;  %s1383_s30 = smov [#allocation8]  }
  0x28   : > { %p1541_p9 = pnand %p1042_p8, %p1498_p6  ;;  %s205_s12 = sshll.u32 %s1383_s30, 4  ;;  %s206_s12 = int_to_ptr.vmem [resolvable:$true] %s205_s12 }
  0x29   : > { %s1215_s15 = scalar_lea.vmem %s190_s14, 2048  ;;  %p1223_p1 = scmp.lt.s32.totalorder %s190_s14, %s190_s14 }
  0x2a   : > { %p1206_p10 = pneg %p1541_p9  ;;  %p1216_p11 = scmp.ne.s32.totalorder %s190_s14, %s1215_s15 }
  0x2b   : > { %p1224_p2 = scmp.lt.s32.totalorder %s1215_s15, %s1215_s15 }
  0x2c   : > { %p1218_p13 = pnand %p1216_p11, %p1206_p10 }
  0x2d   : > { %p1225_p4 = por %p1224_p2, %p1223_p1 }
  0x2e   : > { %p1219_p0 = pneg %p1218_p13 }
  0x30   : > { %p1226_p8 = pnand %p1225_p4, %p1219_p0 }
  0x32   : > { %1229 = shalt.err (!%p1226_p8)
}
  0x33   : > { %s1384_s9 = smov 128   ;;  %s1385_s7 = smov 8  }
  0x34   : > { %s1711_s1 = sld [smem:[#allocation23_spill]]  ;;  %s1241_s17 = scalar_lea.vmem %s206_s12, 2048 }
  0x35   : > { %p1242_p12 = scmp.ne.s32.totalorder %s206_s12, %s1241_s17  ;;  %p1249_p6 = scmp.lt.s32.totalorder %s206_s12, %s206_s12 }
  0x36   : > { %p1250_p7 = scmp.lt.s32.totalorder %s1241_s17, %s1241_s17 }
  0x37   : > { %p1244_p11 = pnand %p1242_p12, %p1206_p10 }
  0x38   : > { %p1251_p1 = por %p1250_p7, %p1249_p6 }
  0x39   : > { %p1245_p13 = pneg %p1244_p11 }
  0x3a   : > { %1045 = dma.hbm_to_vmem [thread:$0]  (!%p1541_p9), %s1711_s1, 2048, %s190_s14, [#allocation7], %s1384_s9, %s1384_s9, %s1385_s7  }
  0x3b   : > { %p1252_p4 = pnand %p1251_p1, %p1245_p13 }
  0x3d   : > { %1255 = shalt.err (!%p1252_p4)
}
  0x3e   : > { %s1386_s15 = smov 64   ;;  %s1387_s20 = smov 4  }
  0x3f   : > { %s1712_s3 = sld [smem:[#allocation24_spill]]  ;;  %p909_p0 = scmp.ge.s32.totalorder %s1380_s28, 8 }
  0x41   : > { %218 = sbr.rel (%p909_p0) target bundleno = 86 (0x56), region = 32 }
  0x45   : > { %1048 = dma.hbm_to_vmem [thread:$0]  (!%p1541_p9), %s1712_s3, 2048, %s206_s12, [#allocation7], %s1386_s15, %s1386_s15, %s1387_s20  }
  0x46   : > { %s222_s7 = sand.u32 1, %s1360_s23   ;;  %s912_s17 = sshll.u32 %s1372_s26, 1 }
  0x47   : > { %s910_s21 = sshll.u32 %s222_s7, 6  ;;  %s961_s14 = sshll.u32 %s1376_s27, 6 }
  0x48   : > { %s233_s8 = sadd.s32 %s961_s14, %s912_s17  ;;  %s226_s9 = scalar_lea.vmem [#allocation3], %s910_s21 }
  0x49   : > { %s248_s18 = sshll.u32 %s226_s9, 4  ;;  %s914_s20 = sshll.u32 %s233_s8, 6  ;;  %s249_s18 = int_to_ptr.vmem [resolvable:$true] %s248_s18 }
  0x4a   : > { %s1027_s6 = scalar_select %p1493_p3, [#allocation0], [#allocation12] }
  0x4b   : > { %s1388_s12 = smov 512   ;;  %s1389_s15 = smov 128  }
  0x4c   : > { %1028 = sst [smem:[#allocation11]] (%p1493_p3), %s1388_s12  ;;  %s1390_s1 = smov 2  }
  0x4d   : > { %s240_s30 = sld [smem:[%s1027_s6]]   ;;  %s1391_s17 = smov 64  }
  0x4e   : > { %1029 = sst [smem:[#allocation11 + $0x1]] (%p1493_p3), %s1389_s15  ;;  %s235_s8 = scalar_lea.hbm %s1680_s0, %s914_s20 }
  0x4f   : > { %1030 = sst [smem:[#allocation11 + $0x2]] (%p1493_p3), %s1390_s1  ;;  %s1392_s9 = smov 4  }
  0x50   : > { %1031 = sst [smem:[#allocation11 + $0x3]] (%p1493_p3), %s1391_s17  ;;  %s223_s3 = scalar_lea.sflag [#allocation4], %s222_s7 }
  0x51   : > { %1032 = sst [smem:[#allocation11 + $0x4]] (%p1493_p3), %s1391_s17  ;;  %s1393_s15 = smov 131072  }
  0x52   : > { %1033 = sst [smem:[#allocation11 + $0x5]] (%p1493_p3), %s1392_s9 }
  0x53   : > { %s915_s6 = sshll.u32 %s240_s30, 26 }
  0x54   : > { %s916_s12 = sadd.s32 134217728, %s915_s6 }
  0x55   : > { %1034 = dma.general (%p1493_p3), %s235_s8, 1024, %s249_s18, %s223_s3, %s1393_s15, [#allocation11], %s916_s12, 0  }
  0x56 PF: > { %273 = sbr.rel (%p1533_p5) target bundleno = 904 (0x388), region = 40  ;;  %s275_s1 = sand.u32 (!%p1533_p5), 1, %s1356_s22  }
  0x57   : > { %s918_s21 = sshll.u32 (!%p1533_p5), %s275_s1, 6  ;;  %s276_s20 = scalar_lea.sflag (!%p1533_p5), [#allocation4], %s275_s1 }
  0x58   : > { %s279_s14 = scalar_lea.vmem (!%p1533_p5), [#allocation3], %s918_s21  ;;  %p1713_p6 = scmp.ne.s32.totalorder (!%p1533_p5), %s1703_s13, 0 }
  0x5b   : > { %1327 = dma.done.wait (%p1713_p6), %s276_s20, 1024  }
  0x5c   : > { %1329 = vsyncadd (%p1713_p6), %s276_s20, 4294966272  ;;  %p1714_p7 = scmp.ne.s32.totalorder %s1701_s11, 0 }
  0x5e   : > { %1331 = dma.done.wait (%p1714_p7), [#allocation7], 4096  }
  0x5f   : > { %1333 = vsyncadd (%p1714_p7), [#allocation7], 4294963200  ;;  %s311_s3 = sand.u32 1, %s1344_s19   ;;  %p922_p3 = scmp.ne.s32.totalorder %s1364_s24, 0 }
  0x60   : > { %s1600_s10 = sshll.u32 %s311_s3, 3 }
  0x61   : > { %s313_s29 = scalar_lea.vmem [#allocation9], %s1600_s10  ;;  %320 = sbr.rel (%p922_p3) target bundleno = 104 (0x68), region = 56 }
  0x66   : > { %v1394_v0 = vmov 0.0  }
  0x67   : > { %321 = vst [vmem:[#allocation2] sm:$0xff] %v1394_v0 }
  0x68 PF: > { %v963_v1 = vld [vmem:[%s279_s14] sm:$0xff]   ;;  %v994_v2 = vld [vmem:[%s279_s14 + $0x8] sm:$0xff]   ;;  %v995_v7 = vld [vmem:[%s279_s14 + $0x10] sm:$0xff]   ;;  %vm419_vm0 = vcmask 1041409   ;;  %vm421_vm1 = vcmask 1042434   ;;  %vm423_vm2 = vcmask 1043459  }
  0x69   : > { %v964_v3 = vunpack.c.l.bf16 %v963_v1  ;;  %v965_v4 = vunpack.c.h.bf16 %v963_v1  ;;  %v968_v5 = vunpack.c.l.bf16 %v994_v2  ;;  %v969_v6 = vunpack.c.h.bf16 %v994_v2  ;;  %v996_v8 = vld [vmem:[%s279_s14 + $0x18] sm:$0xff]   ;;  %v997_v9 = vld [vmem:[%s279_s14 + $0x20] sm:$0xff]   ;;  %v998_v14 = vld [vmem:[%s279_s14 + $0x28] sm:$0xff]   ;;  %p923_p12 = scmp.ne.s32.totalorder %s1364_s24, 3 }
  0x6a   : > { %v972_v10 = vunpack.c.l.bf16 %v995_v7  ;;  %v973_v11 = vunpack.c.h.bf16 %v995_v7  ;;  %v976_v12 = vunpack.c.l.bf16 %v996_v8  ;;  %v977_v13 = vunpack.c.h.bf16 %v996_v8  ;;  %v999_v15 = vld [vmem:[%s279_s14 + $0x30] sm:$0xff]   ;;  %v1000_v16 = vld [vmem:[%s279_s14 + $0x38] sm:$0xff]  }
  0x6b   : > { %v980_v17 = vunpack.c.l.bf16 %v997_v9  ;;  %v981_v18 = vunpack.c.h.bf16 %v997_v9  ;;  %v984_v19 = vunpack.c.l.bf16 %v998_v14  ;;  %v985_v20 = vunpack.c.h.bf16 %v998_v14 }
  0x6c   : > { %v988_v21 = vunpack.c.l.bf16 %v999_v15  ;;  %v989_v22 = vunpack.c.h.bf16 %v999_v15  ;;  %v992_v23 = vunpack.c.l.bf16 %v1000_v16  ;;  %v993_v24 = vunpack.c.h.bf16 %v1000_v16 }
  0x6d   : > { %v355_v25 = vadd.f32 %v965_v4, %v964_v3  ;;  %v362_v26 = vadd.f32 %v969_v6, %v968_v5  ;;  %v369_v27 = vadd.f32 %v973_v11, %v972_v10  ;;  %v376_v28 = vadd.f32 %v977_v13, %v976_v12 }
  0x6e   : > { %v383_v29 = vadd.f32 %v981_v18, %v980_v17  ;;  %v390_v30 = vadd.f32 %v985_v20, %v984_v19  ;;  %v397_v31 = vadd.f32 %v989_v22, %v988_v21  ;;  %v404_v32 = vadd.f32 %v993_v24, %v992_v23  ;;  %v322_v21 = vld [vmem:[#allocation2] sm:$0xff] }
  0x6f   : > { %v356_v33 = vrot.slane %v355_v25, 4  ;;  %v363_v34 = vrot.slane %v362_v26, 4  ;;  %v370_v35 = vrot.slane %v369_v27, 4  ;;  %v377_v36 = vrot.slane %v376_v28, 4 }
  0x70   : > { %v384_v37 = vrot.slane %v383_v29, 4  ;;  %v391_v38 = vrot.slane %v390_v30, 4  ;;  %v398_v39 = vrot.slane %v397_v31, 4  ;;  %v405_v40 = vrot.slane %v404_v32, 4 }
  0x71   : > { %v357_v41 = vadd.f32 %v356_v33, %v355_v25  ;;  %v364_v42 = vadd.f32 %v363_v34, %v362_v26  ;;  %v371_v43 = vadd.f32 %v370_v35, %v369_v27  ;;  %v378_v44 = vadd.f32 %v377_v36, %v376_v28 }
  0x72   : > { %v385_v45 = vadd.f32 %v384_v37, %v383_v29  ;;  %v392_v46 = vadd.f32 %v391_v38, %v390_v30  ;;  %v399_v47 = vadd.f32 %v398_v39, %v397_v31  ;;  %v406_v48 = vadd.f32 %v405_v40, %v404_v32 }
  0x73   : > { %v358_v49 = vrot.slane %v357_v41, 2  ;;  %v365_v50 = vrot.slane %v364_v42, 2  ;;  %v372_v51 = vrot.slane %v371_v43, 2  ;;  %v379_v52 = vrot.slane %v378_v44, 2 }
  0x74   : > { %v386_v53 = vrot.slane %v385_v45, 2  ;;  %v393_v54 = vrot.slane %v392_v46, 2  ;;  %v400_v55 = vrot.slane %v399_v47, 2  ;;  %v407_v56 = vrot.slane %v406_v48, 2 }
  0x75   : > { %v359_v57 = vadd.f32 %v358_v49, %v357_v41  ;;  %v366_v58 = vadd.f32 %v365_v50, %v364_v42  ;;  %v373_v59 = vadd.f32 %v372_v51, %v371_v43  ;;  %v380_v60 = vadd.f32 %v379_v52, %v378_v44 }
  0x76   : > { %v387_v61 = vadd.f32 %v386_v53, %v385_v45  ;;  %v394_v62 = vadd.f32 %v393_v54, %v392_v46  ;;  %v401_v63 = vadd.f32 %v400_v55, %v399_v47  ;;  %v408_v0 = vadd.f32 %v407_v56, %v406_v48 }
  0x77   : > { %v360_v1 = vrot.slane %v359_v57, 1  ;;  %v367_v2 = vrot.slane %v366_v58, 1  ;;  %v374_v3 = vrot.slane %v373_v59, 1  ;;  %v381_v4 = vrot.slane %v380_v60, 1 }
  0x78   : > { %v388_v5 = vrot.slane %v387_v61, 1  ;;  %v395_v6 = vrot.slane %v394_v62, 1  ;;  %v402_v7 = vrot.slane %v401_v63, 1  ;;  %v409_v8 = vrot.slane %v408_v0, 1 }
  0x79   : > { %v361_v9 = vadd.f32 %v360_v1, %v359_v57  ;;  %v368_v10 = vadd.f32 %v367_v2, %v366_v58  ;;  %v375_v11 = vadd.f32 %v374_v3, %v373_v59  ;;  %v382_v12 = vadd.f32 %v381_v4, %v380_v60 }
  0x7a   : > { %v389_v13 = vadd.f32 %v388_v5, %v387_v61  ;;  %v396_v14 = vadd.f32 %v395_v6, %v394_v62  ;;  %vm425_vm3 = vcmask 1044484   ;;  %v403_v16 = vadd.f32 %v402_v7, %v401_v63 }
  0x7b   : > { %v420_v15 = vsel %vm419_vm0, %v368_v10, %v361_v9  ;;  %vm427_vm4 = vcmask 1045509   ;;  %v410_v18 = vadd.f32 %v409_v8, %v408_v0  ;;  %vm429_vm5 = vcmask 1046534  }
  0x7c   : > { %v422_v17 = vsel %vm421_vm1, %v375_v11, %v420_v15  ;;  %vm431_vm6 = vcmask 1047559  }
  0x7d   : > { %v424_v19 = vsel %vm423_vm2, %v382_v12, %v422_v17 }
  0x7e   : > { %v426_v20 = vsel %vm425_vm3, %v389_v13, %v424_v19 }
  0x7f   : > { %v428_v22 = vsel %vm427_vm4, %v396_v14, %v426_v20 }
  0x80   : > { %v430_v23 = vsel %vm429_vm5, %v403_v16, %v428_v22  ;;  %439 = sbr.rel (%p923_p12) target bundleno = 880 (0x370), region = 60 }
  0x81   : > { %v432_v24 = vsel %vm431_vm6, %v410_v18, %v430_v23 }
  0x82   : > { %v434_v25 = vadd.f32 %v432_v24, %v322_v21 }
  0x84   : > { %435 = vst [vmem:[#allocation2] sm:$0xff] %v434_v25 }
  0x85   : > { %v1160_v26 = vld [vmem:[#allocation6 + $0x74] ss:$8 sps:$4 sm:$0xff]   ;;  %v1162_v27 = vld [vmem:[#allocation6 + $0x70] ss:$8 sps:$4 sm:$0xff]   ;;  %v1395_v28 = vmov 0   ;;  %v1188_v41 = vld [vmem:[#allocation8 + $0x68] sm:$0xff]   ;;  %v460_v61 = vlaneseq }
  0x86   : > { %582 = vmatprep.mubr.bf16.mxu0 %v1395_v28  ;;  %550 = vmatprep.subr.bf16.mxu0 %v1160_v26  ;;  %v1163_v29 = vld [vmem:[#allocation6 + $0x64] ss:$8 sps:$4 sm:$0xff]   ;;  %v1165_v30 = vld [vmem:[#allocation6 + $0x60] ss:$8 sps:$4 sm:$0xff]   ;;  %v1166_v31 = vld [vmem:[#allocation6 + $0x54] ss:$8 sps:$4 sm:$0xff]  }
  0x87   : > { %551 = vmatpush1.bf16.msra.mxu0 %v1162_v27  ;;  %v1168_v32 = vld [vmem:[#allocation6 + $0x50] ss:$8 sps:$4 sm:$0xff]   ;;  %v1169_v33 = vld [vmem:[#allocation6 + $0x44] ss:$8 sps:$4 sm:$0xff]   ;;  %v1171_v34 = vld [vmem:[#allocation6 + $0x40] ss:$8 sps:$4 sm:$0xff]  }
  0x88   : > { %552 = vmatprep.subr.bf16.mxu0 %v1163_v29  ;;  %v1172_v35 = vld [vmem:[#allocation6 + $0x34] ss:$8 sps:$4 sm:$0xff]   ;;  %v1174_v38 = vld [vmem:[#allocation6 + $0x30] ss:$8 sps:$4 sm:$0xff]   ;;  %v1175_v42 = vld [vmem:[#allocation6 + $0x24] ss:$8 sps:$4 sm:$0xff]  }
  0x89   : > { %v1184_v36 = vld [vmem:[#allocation8 + $0x78] sm:$0xff]   ;;  %v1186_v39 = vld [vmem:[#allocation8 + $0x70] sm:$0xff]   ;;  %v1177_v43 = vld [vmem:[#allocation6 + $0x20] ss:$8 sps:$4 sm:$0xff]   ;;  %v461_v62 = vshrl.u32 %v460_v61, 7  ;;  %v771_v14 = vand.u32 127, %v460_v61 }
  0x8a   : > { %v1185_v37 = vld [vmem:[#allocation8 + $0x38] sm:$0xff]   ;;  %1001 = vmatprep.subr.bf16.mxu1 %v1184_v36  ;;  %v1187_v40 = vld [vmem:[#allocation8 + $0x30] sm:$0xff]   ;;  %v1189_v44 = vld [vmem:[#allocation8 + $0x28] sm:$0xff]  }
  0x8b   : > { %553 = vmatpush1.bf16.msra.mxu0 %v1165_v30  ;;  %1002 = vmatpush3.bf16.msra.mxu1 %v1185_v37  ;;  %v1190_v45 = vld [vmem:[#allocation8 + $0x60] sm:$0xff]   ;;  %v1178_v46 = vld [vmem:[#allocation6 + $0x14] ss:$8 sps:$4 sm:$0xff]   ;;  %v1180_v47 = vld [vmem:[#allocation6 + $0x10] ss:$8 sps:$4 sm:$0xff]   ;;  %v462_v63 = vsub.s32 0, %v461_v62 }
  0x8c   : > { %554 = vmatprep.subr.bf16.mxu0 %v1166_v31  ;;  %1003 = vmatprep.subr.bf16.mxu1 %v1186_v39  ;;  %v1181_v48 = vld [vmem:[#allocation6 + $0x4] ss:$8 sps:$4 sm:$0xff]   ;;  %v1192_v50 = vld [vmem:[#allocation8 + $0x58] sm:$0xff]   ;;  %v1183_v52 = vld [vmem:[#allocation6] ss:$8 sps:$4 sm:$0xff]   ;;  %v466_v1 = vsub.s32 1, %v461_v62 }
  0x8d   : > { %v1191_v49 = vld [vmem:[#allocation8 + $0x20] sm:$0xff]   ;;  %v1193_v51 = vld [vmem:[#allocation8 + $0x18] sm:$0xff]   ;;  %v1194_v54 = vld [vmem:[#allocation8 + $0x50] sm:$0xff]   ;;  %vm772_vm7 = vcmp.ge.s32.totalorder %v771_v14, 5  ;;  %vm773_vm8 = vcmp.lt.s32.totalorder %v771_v14, 12 }
  0x8e   : > { %v440_v53 = vld [vmem:[#allocation2] sm:$0xff]  ;;  %v1195_v56 = vld [vmem:[#allocation8 + $0x10] sm:$0xff]   ;;  %v1196_v57 = vld [vmem:[#allocation8 + $0x48] sm:$0xff]  }
  0x8f   : > { %555 = vmatpush1.bf16.msra.mxu0 %v1168_v32  ;;  %1004 = vmatpush3.bf16.msra.mxu1 %v1187_v40  ;;  %v441_v55 = vpack.c.bf16 %v440_v53, %v440_v53  ;;  %v1197_v58 = vld [vmem:[#allocation8 + $0x8] sm:$0xff]   ;;  %v1198_v59 = vld [vmem:[#allocation8 + $0x40] sm:$0xff]   ;;  %v458_v0 = vld [vmem:[%s1682_s2] sm:$0x3] }
  0x90   : > { %556 = vmatprep.subr.bf16.mxu0 %v1169_v33  ;;  %1005 = vmatprep.subr.bf16.mxu1 %v1188_v41  ;;  %v1199_v60 = vld [vmem:[#allocation8] sm:$0xff]   ;;  %v463_v2 = vrot.slane %v458_v0, %v462_v63  ;;  %v467_v3 = vrot.slane %v458_v0, %v466_v1  ;;  %v940_v17 = vld [vmem:[%s1684_s4] ss:$0 sm:$0xff]  ;;  %vm1613_vm9 = vmand %vm772_vm7, %vm773_vm8 }
  0x93   : > { %557 = vmatpush1.bf16.msra.mxu0 %v1171_v34  ;;  %1006 = vmatpush3.bf16.msra.mxu1 %v1189_v44 }
  0x94   : > { %558 = vmatprep.subr.bf16.mxu0 %v1172_v35  ;;  %1007 = vmatprep.subr.bf16.mxu1 %v1190_v45 }
  0x97   : > { %559 = vmatpush1.bf16.msra.mxu0 %v1174_v38  ;;  %1008 = vmatpush3.bf16.msra.mxu1 %v1191_v49 }
  0x98   : > { %560 = vmatprep.subr.bf16.mxu0 %v1175_v42  ;;  %1009 = vmatprep.subr.bf16.mxu1 %v1192_v50 }
  0x9b   : > { %561 = vmatpush1.bf16.msra.mxu0 %v1177_v43  ;;  %1010 = vmatpush3.bf16.msra.mxu1 %v1193_v51 }
  0x9c   : > { %562 = vmatprep.subr.bf16.mxu0 %v1178_v46  ;;  %1011 = vmatprep.subr.bf16.mxu1 %v1194_v54 }
  0x9f   : > { %563 = vmatpush1.bf16.msra.mxu0 %v1180_v47  ;;  %1012 = vmatpush3.bf16.msra.mxu1 %v1195_v56 }
  0xa0   : > { %564 = vmatprep.subr.bf16.mxu0 %v1181_v48  ;;  %1013 = vmatprep.subr.bf16.mxu1 %v1196_v57 }
  0xa3   : > { %565 = vmatpush1.bf16.msra.mxu0 %v1183_v52  ;;  %1014 = vmatpush3.bf16.msra.mxu1 %v1197_v58 }
  0xa4   : > { %1015 = vmatprep.subr.bf16.mxu1 %v1198_v59 }
  0xa6   : > { %583 = vmatmul.mubr.bf16.vlgmr.msra.gmra.mxu0 %v441_v55 }
  0xa7   : > { %1016 = vmatpush3.bf16.msra.mxu1 %v1199_v60 }
 0x166   : > { %v584_v4 = vpop.f32.mrf.mxu0 }
 0x167   : > { %v585_v5 = vadd.f32 %v584_v4, %v463_v2 }
 0x168   : > { %v586_v6 = vpop.f32.mrf.mxu0 }
 0x169   : > { %v587_v7 = vadd.f32 %v586_v6, %v467_v3  ;;  %v591_v8 = vmax.f32 %v585_v5, 0.0 }
 0x16a   : > { %v588_v9 = vpop.f32.mrf.mxu0 }
 0x16b   : > { %v592_v10 = vmax.f32 %v587_v7, 0.0  ;;  %v593_v13 = vpack.c.bf16 %v591_v8, %v591_v8 }
 0x16c   : > { %v589_v11 = vpop.f32.mrf.mxu0 }
 0x16d   : > { %v594_v12 = vpack.c.bf16 %v592_v10, %v592_v10 }
 0x16f   : > { %762 = vmatprep.mubr.bf16.mxu1 %v594_v12 }
 0x170   : > { %763 = vmatmul.mubr.bf16.vlgmr.msra.gmra.mxu1 %v593_v13 }
 0x230   : > { %v1017_v15 = vpop.f32.mrf.mxu1 }
 0x232   : > { %v1018_v16 = vpop.f32.mrf.mxu1 }
 0x233   : > { %v1019_v18 = vadd.f32 %v1018_v16, %v1017_v15 }
 0x234   : > { %v1020_v19 = vpop.f32.mrf.mxu1 }
 0x235   : > { %v765_v21 = vadd.f32 %v1019_v18, %v940_v17 }
 0x236   : > { %v1021_v22 = vpop.f32.mrf.mxu1 }
 0x237   : > { %v775_v23 = vsel %vm1613_vm9, %v765_v21, -1e+30 }
 0x238   : > { %776 = vmax.xlane.f32.xlu0 %v775_v23 }
 0x2c1   : > { %v777_v24 = vpop.xlane.xlu0 %776 }
 0x2c2   : > { %v778_v25 = vsub.f32 %v775_v23, %v777_v24 }
 0x2c4   : > { %v779_v26 = vmul.f32 1.442695, %v778_v25 }
 0x2c6   : > { %1200 = vpow2.f32 %v779_v26 }
 0x2d3   : > { %v1201_v27 = vpop.eup %1200 }
 0x2d4   : > { %781 = vadd.xlane.f32.xlu0 %v1201_v27 }
 0x35d   : > { %v782_v28 = vpop.xlane.xlu0 %781 }
 0x35e   : > { %1202 = vrcp.f32 %v782_v28 }
 0x36b   : > { %v1203_v29 = vpop.eup %1202 }
 0x36c   : > { %v784_v30 = vmul.f32 %v1203_v29, %v1201_v27 }
 0x36e   : > { %v785_v31 = vsel %vm1613_vm9, %v784_v30, %v765_v21 }
 0x36f   : > { %786 = vst [vmem:[%s313_s29] sm:$0xff] %v785_v31 }
 0x370 PF: > { %s958_s18 = sshll.u32 %s1368_s25, 7  ;;  %s801_s9 = sshll.u32 %s313_s29, 4  ;;  %s802_s9 = int_to_ptr.vmem [resolvable:$true] %s801_s9 }
 0x371   : > { %s799_s8 = scalar_lea.hbm %s1685_s5, %s958_s18  ;;  %s788_s6 = scalar_lea.sflag [#allocation5], %s311_s3 }
 0x372   : > { %s1256_s12 = scalar_lea.vmem %s802_s9, 128  ;;  %p1717_p9 = scmp.ne.s32.totalorder %s1704_s16, 0 }
 0x373   : > { %p1257_p5 = scmp.ne.s32.totalorder %s802_s9, %s1256_s12  ;;  %s1396_s15 = smov [#allocation9]  }
 0x374   : > { %s1260_s1 = sshll.u32 %s1396_s15, 4  ;;  %s1261_s1 = int_to_ptr.vmem [resolvable:$false] %s1260_s1 }
 0x375   : > { %p1258_p10 = pnand %p1257_p5, %p1717_p9  ;;  %s1262_s21 = scalar_lea.vmem %s1261_s1, 256 }
 0x376   : > { %p1263_p8 = scmp.lt.s32.totalorder %s802_s9, %s1261_s1  ;;  %p1264_p11 = scmp.lt.s32.totalorder %s1262_s21, %s1256_s12 }
 0x377   : > { %p1259_p2 = pneg %p1258_p10 }
 0x378   : > { %p1265_p13 = por %p1264_p11, %p1263_p8 }
 0x37a   : > { %p1266_p1 = pnand %p1265_p13, %p1259_p2 }
 0x37c   : > { %1269 = shalt.err (!%p1266_p1)
}
 0x37d   : > { %s1270_s25 = scalar_lea.hbm %s799_s8, 128  ;;  %s1274_s3 = scalar_lea.hbm %s1685_s5, 256 }
 0x37e   : > { %p1271_p4 = scmp.ne.s32.totalorder %s799_s8, %s1270_s25  ;;  %p1275_p7 = scmp.lt.s32.totalorder %s799_s8, %s1685_s5 }
 0x37f   : > { %p1276_p3 = scmp.lt.s32.totalorder %s1274_s3, %s1270_s25 }
 0x380   : > { %p1272_p0 = pnand %p1271_p4, %p1717_p9 }
 0x381   : > { %p1277_p12 = por %p1276_p3, %p1275_p7 }
 0x382   : > { %p1273_p6 = pneg %p1272_p0 }
 0x384   : > { %p1278_p5 = pnand %p1277_p12, %p1273_p6 }
 0x386   : > { %1281 = shalt.err (!%p1278_p5)
}
 0x387   : > { %1040 = dma.vmem_to_hbm [thread:$0]  (%p1717_p9), %s802_s9, 128, %s799_s8, %s788_s6  }
 0x388 PF: > { %s1718_s24 = sld [smem:[#allocation16_spill]]  ;;  %p1057_p10 = scmp.ge.s32.totalorder %s1380_s28, 2 }
 0x389   : > { %s1719_s11 = sld [smem:[#allocation22_spill]] }
 0x38e   : > { %s813_s13 = sand.u32 1, %s1718_s24  }
 0x38f   : > { %p1720_p2 = scmp.ne.s32.totalorder %s1719_s11, 0  ;;  %s814_s7 = scalar_lea.sflag [#allocation5], %s813_s13 }
 0x391   : > { %p1050_p8 = pnand %p1057_p10, %p1720_p2 }
 0x393   : > { %p1051_p11 = pneg %p1050_p8 }
 0x395   : > { %1335 = dma.done.wait (%p1051_p11), %s814_s7, 128  }
 0x396   : > { %1337 = vsyncadd (%p1051_p11), %s814_s7, 4294967168  ;;  %s22_s28 = sadd.s32 1, %s1380_s28   ;;  %s1721_s30 = sld [smem:[#allocation17_spill]] }
 0x397   : > { %p19_p13 = scmp.ge.s32.totalorder %s22_s28, 10   ;;  %s1722_s20 = sld [smem:[#allocation20_spill]] }
 0x398   : > { %s1723_s16 = sld [smem:[#allocation21_spill]]  ;;  %s1726_s18 = smov %s1344_s19 }
 0x399   : > { %s1724_s17 = sld [smem:[#allocation18_spill]]  ;;  %s1728_s21 = smov %s1356_s22 }
 0x39a   : > { %s1725_s8 = sld [smem:[#allocation19_spill]]  ;;  %s1729_s22 = smov %s1360_s23 }
 0x39b   : > { %s1731_s24 = smov %s1372_s26  ;;  %s1732_s25 = smov %s1376_s27 }
 0x39c   : > { %s1727_s19 = smov %s1721_s30  ;;  %21 = sbr.rel (!%p19_p13) target bundleno = 13 (0xd), region = 106 }
 0x39e   : > { %s1730_s23 = smov %s1723_s16 }
 0x39f   : > { %s1733_s26 = smov %s1724_s17 }
 0x3a0   : > { %s1734_s27 = smov %s1725_s8 }
 0x3a1   :  { %819 = vsyncpa [#allocation4], 1 }
 0x3a2   :  { %821 = vsyncpa [#allocation4 + $0x1], 1 }
 0x3a3   :  { %822 = vsyncpa [#allocation7], 1 }
 0x3a4   :  { %823 = vsyncpa [#allocation5], 1 }
 0x3a5   :  { %825 = vsyncpa [#allocation5 + $0x1], 1 }

</bundles_post_ra>
